<compile_context>
chip_gen: v7x
topology: tpu7x:2x2x1
jax: 0.10.0
libtpu: 0.0.40
codegen_flags: <defaults>
</compile_context>

<pallas_src>
import jax
import jax.numpy as jnp
from jax.experimental import pallas as pl
from jax.experimental.pallas import tpu as pltpu


def linear_sigmoid_kernel(x_ref, w_ref, b_ref, va_ref, v1_ref):
    # x: [B, IN], w: [OUT, IN] (PyTorch nn.Linear layout), b: [1, OUT]
    x = x_ref[...]
    w = w_ref[...]
    b = b_ref[...]
    out_features = w.shape[0]

    # VPU-only linear: unroll the tiny OUT dim; each output column is a
    # broadcasted elementwise multiply over IN (lanes) followed by a lane
    # reduce (XLU). No MXU, no transpose.
    cols = [
        jnp.sum(x * w[o:o + 1, :], axis=-1, keepdims=True)  # [B, 1]
        for o in range(out_features)
    ]
    v1 = jnp.concatenate(cols, axis=-1) + b                   # [B, OUT], f32

    v1_ref[...] = v1.astype(v1_ref.dtype)
    # sigmoid = 1 / (1 + exp(-v1)); exp and approx-reciprocal both hit the EUP.
    va = pl.reciprocal(1.0 + jnp.exp(-v1), approx=True)
    va_ref[...] = va.astype(va_ref.dtype)


def linear_sigmoid(x, w, b):
    """x: [B, IN] f32, w: [OUT, IN] f32, b: [OUT] f32 -> (sigmoid(v1), v1)."""
    B, _ = x.shape
    OUT = w.shape[0]
    b2d = b.reshape(1, OUT)

    vmem_spec = pl.BlockSpec(memory_space=pltpu.MemorySpace.VMEM)

    va, v1 = pl.pallas_call(
        linear_sigmoid_kernel,
        out_shape=(
            jax.ShapeDtypeStruct((B, OUT), jnp.float32),
            jax.ShapeDtypeStruct((B, OUT), jnp.float32),
        ),
        in_specs=[vmem_spec, vmem_spec, vmem_spec],
        out_specs=(vmem_spec, vmem_spec),
    )(x, w, b2d)
    return va, v1


if __name__ == "__main__":
    key = jax.random.PRNGKey(0)
    kx, kw, kb = jax.random.split(key, 3)

    # Input shape from the module: x1 = torch.randn(2, 8)
    x1 = jax.random.normal(kx, (2, 8), dtype=jnp.float32)

    # Deterministic parameter init mimicking nn.Linear(8, 2):
    # uniform(-1/sqrt(in_features), 1/sqrt(in_features))
    bound = 1.0 / jnp.sqrt(8.0)
    w = jax.random.uniform(kw, (2, 8), minval=-bound, maxval=bound, dtype=jnp.float32)
    b = jax.random.uniform(kb, (2,), minval=-bound, maxval=bound, dtype=jnp.float32)

    va, v1 = linear_sigmoid(x1, w, b)
    jax.block_until_ready((va, v1))

    # Sanity check against plain-JAX reference.
    v1_ref = x1 @ w.T + b
    va_ref = jax.nn.sigmoid(v1_ref)
    assert jnp.allclose(v1, v1_ref, atol=1e-5), "linear mismatch"
    # approx reciprocal on the EUP has ~1e-4-level relative error; allow it.
    assert jnp.allclose(va, va_ref, atol=2e-3), "sigmoid mismatch"

    print("KERNEL_OK")
</pallas_src>

<mosaic_0001>
module attributes {stable_mosaic.version = 11 : i64} {
  func.func @linear_sigmoid_kernel(%arg0: memref<2x8xf32, #tpu.memory_space<vmem>>, %arg1: memref<2x8xf32, #tpu.memory_space<vmem>>, %arg2: memref<1x2xf32, #tpu.memory_space<vmem>>, %arg3: memref<2x2xf32, #tpu.memory_space<vmem>>, %arg4: memref<2x2xf32, #tpu.memory_space<vmem>>) attributes {dimension_semantics = [], scalar_prefetch = 0 : i64, scratch_operands = 0 : i64, tpu.core_type = #tpu.core_type<tc>} {
    %c0 = arith.constant 0 : index
    %c0_0 = arith.constant 0 : index
    %0 = vector.load %arg0[%c0, %c0_0] : memref<2x8xf32, #tpu.memory_space<vmem>>, vector<2x8xf32>
    %c0_1 = arith.constant 0 : index
    %c0_2 = arith.constant 0 : index
    %1 = vector.load %arg1[%c0_1, %c0_2] : memref<2x8xf32, #tpu.memory_space<vmem>>, vector<2x8xf32>
    %c0_3 = arith.constant 0 : index
    %c0_4 = arith.constant 0 : index
    %2 = vector.load %arg2[%c0_3, %c0_4] : memref<1x2xf32, #tpu.memory_space<vmem>>, vector<1x2xf32>
    %3 = vector.extract_strided_slice %1 {offsets = [0, 0], sizes = [1, 8], strides = [1, 1]} : vector<2x8xf32> to vector<1x8xf32>
    %4 = vector.broadcast %3 : vector<1x8xf32> to vector<2x8xf32>
    %5 = arith.mulf %0, %4 : vector<2x8xf32>
    %cst = arith.constant dense<0.000000e+00> : vector<2xf32>
    %6 = vector.multi_reduction <add>, %5, %cst [1] : vector<2x8xf32> to vector<2xf32>
    %7 = vector.shape_cast %6 : vector<2xf32> to vector<2x1xf32>
    %8 = vector.extract_strided_slice %1 {offsets = [1, 0], sizes = [1, 8], strides = [1, 1]} : vector<2x8xf32> to vector<1x8xf32>
    %9 = vector.broadcast %8 : vector<1x8xf32> to vector<2x8xf32>
    %10 = arith.mulf %0, %9 : vector<2x8xf32>
    %cst_5 = arith.constant dense<0.000000e+00> : vector<2xf32>
    %11 = vector.multi_reduction <add>, %10, %cst_5 [1] : vector<2x8xf32> to vector<2xf32>
    %12 = vector.shape_cast %11 : vector<2xf32> to vector<2x1xf32>
    %13 = tpu.concatenate %7, %12 in 1 : vector<2x1xf32>, vector<2x1xf32> -> vector<2x2xf32>
    %14 = vector.broadcast %2 : vector<1x2xf32> to vector<2x2xf32>
    %15 = arith.addf %13, %14 : vector<2x2xf32>
    %c0_6 = arith.constant 0 : index
    %c0_7 = arith.constant 0 : index
    %16 = vector.load %arg4[%c0_6, %c0_7] : memref<2x2xf32, #tpu.memory_space<vmem>>, vector<2x2xf32>
    tpu.vector_store %arg4[%c0_6, %c0_7], %15 {strides = array<i32>} : memref<2x2xf32, #tpu.memory_space<vmem>>, vector<2x2xf32>,
    %cst_8 = arith.constant 0.000000e+00 : f32
    %17 = vector.broadcast %cst_8 : f32 to vector<2x2xf32>
    %18 = arith.subf %17, %15 : vector<2x2xf32>
    %19 = math.exp %18 : vector<2x2xf32>
    %cst_9 = arith.constant 1.000000e+00 : f32
    %20 = vector.broadcast %cst_9 : f32 to vector<2x2xf32>
    %21 = arith.addf %20, %19 : vector<2x2xf32>
    %22 = tpu.reciprocal %21 {approx = true} : vector<2x2xf32> -> vector<2x2xf32>
    %c0_10 = arith.constant 0 : index
    %c0_11 = arith.constant 0 : index
    %23 = vector.load %arg3[%c0_10, %c0_11] : memref<2x2xf32, #tpu.memory_space<vmem>>, vector<2x2xf32>
    tpu.vector_store %arg3[%c0_10, %c0_11], %22 {strides = array<i32>} : memref<2x2xf32, #tpu.memory_space<vmem>>, vector<2x2xf32>,
    return
  }
}

</mosaic_0001>

<bundles_post_ra>
// kernel: tpu_custom_call.1
= control target key start
LH: loop header
LB: loop body
LE: loop exit
PB: predicated region body
PF: predicated region fallthrough
CT: control target
= control target key end

     0   :  { %10 = vsyncpa [#allocation3], 0  ;;  %s248_s0 = inlined_call_operand.hbm [shape: f32[2,8], index: 0, kind: input, shape index: {}]   ;;  %s249_s1 = inlined_call_operand.vmem [shape: f32[2,8], index: 1, kind: input, shape index: {}]   ;;  %s250_s2 = inlined_call_operand.vmem [shape: f32[1,2], index: 2, kind: input, shape index: {}]   ;;  %s251_s3 = inlined_call_operand.hbm [shape: f32[2,2], index: 3, kind: output, shape index: {0}]   ;;  %s252_s4 = inlined_call_operand.hbm [shape: f32[2,2], index: 4, kind: output, shape index: {1}]  }
   0x1   :  { %11 = vsyncpa [#allocation4], 0 }
   0x2   :  { %12 = vsyncpa [#allocation7], 0  ;;  %s176_s15 = smov [#allocation2]   ;;  %s104_s19 = scalar_lea.hbm %s248_s0, 32 }
   0x3   :  { %s19_s16 = sshll.u32 %s176_s15, 4  ;;  %p105_p0 = scmp.ne.s32.totalorder %s248_s0, %s104_s19  ;;  %s20_s16 = int_to_ptr.vmem [resolvable:$true] %s19_s16 }
   0x4   :  { %p108_p1 = scmp.lt.u32.totalorder %s104_s19, %s248_s0 }
   0x6   :  { %p110_p2 = pnand %p108_p1, %p105_p0 }
   0x8   :  { %113 = shalt.err (!%p110_p2)
}
   0x9   :  { %s114_s24 = scalar_lea.vmem %s20_s16, 32  ;;  %p119_p4 = scmp.lt.s32.totalorder %s20_s16, %s20_s16 }
   0xa   :  { %p115_p3 = scmp.ne.s32.totalorder %s20_s16, %s114_s24  ;;  %p120_p5 = scmp.lt.s32.totalorder %s114_s24, %s114_s24 }
   0xc   :  { %p121_p6 = por %p120_p5, %p119_p4 }
   0xe   :  { %p122_p7 = pnand %p121_p6, %p115_p3 }
  0x10   :  { %125 = shalt.err (!%p122_p7)
}
  0x11   :  { %22 = dma.hbm_to_vmem [thread:$0]  %s248_s0, 32, %s20_s16, [#allocation3]  }
  0x12   :  { %170 = dma.done.wait [#allocation3], 32  }
  0x13   :  { %171 = vsyncadd [#allocation3], 4294967264  ;;  %v33_v0 = vlaneseq  ;;  %v30_v4 = vld [vmem:[#allocation2] sm:$0x3]  ;;  %vm38_vm0 = vcmask 58368   ;;  %vm50_vm1 = vcmask 7168  }
  0x14   :  { %v31_v5 = vld [vmem:[%s249_s1] sm:$0x3]  ;;  %s177_s30 = smov [#allocation6]   ;;  %vm59_vm2 = vcmask 9216  }
  0x15   :  { %v34_v1 = vshrl.u32 %v33_v0, 7  ;;  %v96_v13 = vld [vmem:[%s250_s2] ss:$0 sm:$0xff]  ;;  %s83_s5 = sshll.u32 %s177_s30, 4  ;;  %s84_s5 = int_to_ptr.vmem [resolvable:$true] %s83_s5 }
  0x16   :  { %s126_s1 = scalar_lea.vmem %s84_s5, 32  ;;  %p131_p9 = scmp.lt.s32.totalorder %s84_s5, %s84_s5 }
  0x17   :  { %v35_v2 = vsub.s32 0, %v34_v1  ;;  %v44_v3 = vsub.s32 1, %v34_v1  ;;  %p127_p8 = scmp.ne.s32.totalorder %s84_s5, %s126_s1  ;;  %p132_p10 = scmp.lt.s32.totalorder %s126_s1, %s126_s1 }
  0x19   :  { %v36_v6 = vrot.slane %v31_v5, %v35_v2  ;;  %v45_v7 = vrot.slane %v31_v5, %v44_v3  ;;  %p133_p11 = por %p132_p10, %p131_p9 }
  0x1b   :  { %v37_v8 = vmul.f32 %v36_v6, %v30_v4  ;;  %v46_v9 = vmul.f32 %v45_v7, %v30_v4  ;;  %p134_p12 = pnand %p133_p11, %p127_p8 }
  0x1d   :  { %v39_v10 = vsel %vm38_vm0, %v37_v8, 0.0  ;;  %v47_v11 = vsel %vm38_vm0, %v46_v9, 0.0 }
  0x1e   :  { %40 = vadd.xlane.f32.xlu0 %v39_v10 }
  0x22   :  { %48 = vadd.xlane.f32.xlu0 %v47_v11 }
  0xab   :  { %v41_v12 = vpop.xlane.xlu0 %40 }
  0xaf   :  { %v49_v14 = vpop.xlane.xlu0 %48 }
  0xb0   :  { %v51_v15 = vsel %vm50_vm1, %v41_v12, %v49_v14 }
  0xb1   :  { %v58_v16 = vadd.f32 %v96_v13, %v51_v15 }
  0xb3   :  { %v61_v17 = vsub.f32 0.0, %v58_v16  ;;  %60 = vst.msk [vmem:[#allocation6] sm:$0x3] %vm59_vm2, %v58_v16 }
  0xb4   :  { %137 = shalt.err (!%p134_p12)
}
  0xb5   :  { %s138_s2 = scalar_lea.hbm %s252_s4, 32 }
  0xb6   :  { %p139_p13 = scmp.ne.s32.totalorder %s252_s4, %s138_s2  ;;  %p142_p0 = scmp.lt.u32.totalorder %s138_s2, %s252_s4 }
  0xb8   :  { %p144_p1 = pnand %p142_p0, %p139_p13 }
  0xba   :  { %147 = shalt.err (!%p144_p1)
}
  0xbb   :  { %86 = dma.vmem_to_hbm [thread:$0]  %s84_s5, 32, %s252_s4, [#allocation7]   ;;  %v62_v18 = vmul.f32 1.442695, %v61_v17 }
  0xbc   :  { %s178_s14 = smov [#allocation5]  }
  0xbd   :  { %100 = vpow2.f32 %v62_v18  ;;  %s73_s15 = sshll.u32 %s178_s14, 4  ;;  %s74_s15 = int_to_ptr.vmem [resolvable:$true] %s73_s15 }
  0xbe   :  { %s148_s16 = scalar_lea.vmem %s74_s15, 32  ;;  %p153_p3 = scmp.lt.s32.totalorder %s74_s15, %s74_s15 }
  0xbf   :  { %p149_p2 = scmp.ne.s32.totalorder %s74_s15, %s148_s16  ;;  %p154_p4 = scmp.lt.s32.totalorder %s148_s16, %s148_s16 }
  0xc1   :  { %p155_p5 = por %p154_p4, %p153_p3 }
  0xc3   :  { %p156_p6 = pnand %p155_p5, %p149_p2 }
  0xc7   :  { %v101_v19 = vpop.eup %100 }
  0xc8   :  { %v64_v20 = vadd.f32 1.0, %v101_v19 }
  0xca   :  { %102 = vrcp.f32 %v64_v20 }
  0xd4   :  { %v103_v21 = vpop.eup %102 }
  0xd5   :  { %66 = vst.msk [vmem:[#allocation5] sm:$0x3] %vm59_vm2, %v103_v21 }
  0xd6   :  { %159 = shalt.err (!%p156_p6)
}
  0xd7   :  { %s160_s18 = scalar_lea.hbm %s251_s3, 32 }
  0xd8   :  { %p161_p7 = scmp.ne.s32.totalorder %s251_s3, %s160_s18  ;;  %p164_p8 = scmp.lt.u32.totalorder %s160_s18, %s251_s3 }
  0xda   :  { %p166_p9 = pnand %p164_p8, %p161_p7 }
  0xdc   :  { %169 = shalt.err (!%p166_p9)
}
  0xdd   :  { %76 = dma.vmem_to_hbm [thread:$0]  %s74_s15, 32, %s251_s3, [#allocation4]  }
  0xde   :  { %172 = dma.done.wait [#allocation4], 32  }
  0xdf   :  { %173 = vsyncadd [#allocation4], 4294967264 }
  0xe0   :  { %174 = dma.done.wait [#allocation7], 32  }
  0xe1   :  { %175 = vsyncadd [#allocation7], 4294967264 }
  0xe2   :  { %93 = vsyncpa [#allocation3], 1 }
  0xe3   :  { %94 = vsyncpa [#allocation4], 1 }
  0xe4   :  { %95 = vsyncpa [#allocation7], 1 }

</bundles_post_ra>
